<compile_context>
chip_gen: v5e
topology: v5e:2x2
jax: 0.10.0
libtpu: 0.0.40
codegen_flags: <defaults>
</compile_context>

<pallas_src>
import functools

import jax
import jax.numpy as jnp
from jax.experimental import pallas as pl
from jax.experimental.pallas import tpu as pltpu

MAX_TILE_COLS = 65536          # cap on flattened spatial columns per grid step
_MIB = 1024 * 1024


@functools.lru_cache(maxsize=None)
def _vmem_limit_bytes():
    """Generation-aware scoped-VMEM limit (128 MiB chips -> 96 MiB, v7x -> 48 MiB)."""
    cap = None
    try:
        cap = getattr(pltpu.get_tpu_info(), "vmem_capacity_bytes", None)
    except Exception:
        cap = None
    if not cap:
        cap = 64 * _MIB                     # conservative fallback (v7x per-TC)
    return int(max(32 * _MIB, min(3 * int(cap) // 4, 96 * _MIB)))


@functools.lru_cache(maxsize=None)
def _split_factor():
    """2-way grid split only on devices with two schedulable TensorCores."""
    try:
        kind = jax.devices()[0].device_kind.lower()
    except Exception:
        return 1
    return 2 if any(tag in kind for tag in ("v4", "v5p", "v7", "7x")) else 1


def _dice_sums_kernel(x_ref, t_ref, acc_ref, *, hw, tile_cols, chunk,
                      tiles_per_split, n_classes, apply_softmax, may_need_mask):
    """Accumulates per-class [sum(score*onehot), sum(onehot), sum(score^2)].

    x_ref:   (C, chunk, 128) logits for one batch element / spatial tile.
    t_ref:   (1, chunk, 128) raw targets.
    acc_ref: (1, 3, C, 128)  lane-resident per-split accumulators
             (stat 0 = intersect, 1 = y_sum, 2 = z_sum).
    """
    s = pl.program_id(0)   # TensorCore split       (independent accumulators)
    b = pl.program_id(1)   # batch element          (reduction)
    t = pl.program_id(2)   # spatial tile in split  (reduction)

    @pl.when(jnp.logical_and(b == 0, t == 0))
    def _():
        acc_ref[...] = jnp.zeros_like(acc_ref)

    C = n_classes
    nt = min(C, 2)         # binarized target => onehot rows >= 2 are all-zero

    x = x_ref[...].astype(jnp.float32)                     # (C, chunk, 128)
    if apply_softmax:
        # Class axis is the leading (non-layout) dim -> pure VPU reductions.
        m = jnp.max(x, axis=0, keepdims=True)
        e = jnp.exp(x - m)
        denom = jnp.sum(e, axis=0, keepdims=True)
        x = e * (1.0 / denom)                              # exact reciprocal
    # torch.sigmoid via one EUP op: sigmoid(x) = 0.5 * (tanh(x/2) + 1)
    score = 0.5 * (jnp.tanh(0.5 * x) + 1.0)                # (C, chunk, 128)

    # PyTorch: target = (target != 0).float(); onehot[c] = (t_bin == c).
    tb = (t_ref[...] != 0).astype(jnp.float32)             # (1, chunk, 128)
    if nt == 2:
        onehot = jnp.concatenate([1.0 - tb, tb], axis=0)   # classes 0 and 1 only
    else:
        onehot = 1.0 - tb

    def _accumulate(sc, oh):
        # Lane-resident partials: reduce only the sublane (chunk) axis; the
        # single 128-lane reduction happens once in the wrapper.
        inter_p = jnp.sum(sc[:nt] * oh, axis=1)            # (nt, 128)
        ysum_p = jnp.sum(oh, axis=1)                       # (nt, 128); oh*oh == oh
        zsum_p = jnp.sum(sc * sc, axis=1)                  # (C, 128)
        if C > nt:
            pad = jnp.zeros((C - nt, 128), jnp.float32)    # classes >= 2: zero
            inter_p = jnp.concatenate([inter_p, pad], axis=0)
            ysum_p = jnp.concatenate([ysum_p, pad], axis=0)
        upd = jnp.stack([inter_p, ysum_p, zsum_p], axis=0)  # (3, C, 128)
        acc_ref[...] += upd[None]

    if may_need_mask:
        tile_idx = s * tiles_per_split + t                 # logical tile index
        needs_mask = (tile_idx + 1) * tile_cols > hw       # boundary / padded tiles

        @pl.when(needs_mask)
        def _():
            sub = jax.lax.broadcasted_iota(jnp.int32, (1, chunk, 128), 1)
            lane = jax.lax.broadcasted_iota(jnp.int32, (1, chunk, 128), 2)
            col = tile_idx * tile_cols + sub * 128 + lane
            valid = col < hw
            # where(), not multiply: OOB lanes may hold garbage / NaN logits.
            _accumulate(jnp.where(valid, score, 0.0),
                        jnp.where(valid, onehot, 0.0))

        @pl.when(jnp.logical_not(needs_mask))
        def _():
            _accumulate(score, onehot)
    else:
        _accumulate(score, onehot)


def dice_loss(inputs, target, n_classes, weight=None, softmax=False):
    """Equivalent of DiceLoss(n_classes).forward(inputs, target, weight, softmax)."""
    B, C, H, W = inputs.shape
    assert C == n_classes, "channel dim must equal n_classes"
    HW = H * W
    if target.ndim == 4:
        assert target.shape == (B, 1, H, W), (
            f"predict {(B, C, H, W)} & target {target.shape} shape do not match")
        t3 = target.reshape(B, 1, HW)
    else:
        assert target.shape == (B, H, W), (
            f"predict {(B, C, H, W)} & target {target.shape} shape do not match")
        t3 = target.reshape(B, 1, HW)

    # (B, C, H, W) -> (B, C, HW): reshape only, no transpose / upcast.
    x3 = inputs.reshape(B, C, HW)

    # Lane-pack the spatial dim: (B, C, HW) -> (B, C, HW/128, 128).  Free
    # metadata reshape when HW % 128 == 0; otherwise pad (masked in-kernel).
    hw_pad = ((HW + 127) // 128) * 128
    if hw_pad != HW:
        x3 = jnp.pad(x3, ((0, 0), (0, 0), (0, hw_pad - HW)))
        t3 = jnp.pad(t3, ((0, 0), (0, 0), (0, hw_pad - HW)))
    n_chunks = hw_pad // 128
    x4 = x3.reshape(B, C, n_chunks, 128)
    t4 = t3.reshape(B, 1, n_chunks, 128)

    vmem_limit = _vmem_limit_bytes()

    # Column budget: double-buffered input blocks plus an allowance for the
    # f32 tile-sized intermediates, kept within ~half the scoped VMEM limit.
    bytes_per_col = 2 * (C * x4.dtype.itemsize + t4.dtype.itemsize) + 8 * C * 4
    budget_cols = max(1024, (vmem_limit // 2) // bytes_per_col)
    tile_cols_target = min(MAX_TILE_COLS, budget_cols)
    chunk = max(8, (tile_cols_target // 128) // 8 * 8)     # sublane dim, mult of 8
    if chunk >= n_chunks:
        chunk = n_chunks                                   # full-dim block is legal
    tile_cols = chunk * 128

    n_tiles = pl.cdiv(n_chunks, chunk)
    n_split = _split_factor() if n_tiles >= 2 else 1
    tiles_per_split = pl.cdiv(n_tiles, n_split)
    may_need_mask = (n_split * tiles_per_split * tile_cols) != HW

    def in_index(s, b, t):
        # Clamp so padded split slots never go fully OOB; their contribution
        # is removed by the in-kernel logical-position mask.
        return (b, 0, jnp.minimum(s * tiles_per_split + t, n_tiles - 1), 0)

    def acc_index(s, b, t):
        return (s, 0, 0, 0)

    kernel = functools.partial(
        _dice_sums_kernel, hw=HW, tile_cols=tile_cols, chunk=chunk,
        tiles_per_split=tiles_per_split, n_classes=C,
        apply_softmax=bool(softmax), may_need_mask=may_need_mask)

    acc = pl.pallas_call(
        kernel,
        out_shape=jax.ShapeDtypeStruct((n_split, 3, C, 128), jnp.float32),
        grid_spec=pltpu.PrefetchScalarGridSpec(
            num_scalar_prefetch=0,
            grid=(n_split, B, tiles_per_split),
            in_specs=[
                pl.BlockSpec((pl.Squeezed(), C, chunk, 128), in_index),  # logits
                pl.BlockSpec((pl.Squeezed(), 1, chunk, 128), in_index),  # target
            ],
            out_specs=pl.BlockSpec((1, 3, C, 128), acc_index),
        ),
        compiler_params=pltpu.CompilerParams(
            dimension_semantics=("parallel", "arbitrary", "arbitrary"),
            vmem_limit_bytes=vmem_limit),
    )(x4, t4)

    # Single cross-lane reduction on the tiny accumulator output.
    sums = jnp.sum(acc, axis=(0, 3))                       # (3, C)
    inter, ysum, zsum = sums[0], sums[1], sums[2]

    smooth = 1e-05
    dice_c = (2.0 * inter + smooth) / (zsum + ysum + smooth)
    loss_c = 1.0 - dice_c

    if weight is None:
        weight = jnp.ones((n_classes,), jnp.float32)
    else:
        weight = jnp.asarray(weight, jnp.float32)
    return jnp.sum(loss_c * weight) / n_classes


def _dice_loss_reference(inputs, target, n_classes, weight=None, softmax=False):
    """Pure-JAX re-implementation of the PyTorch forward, for checking."""
    if softmax:
        inputs = jax.nn.softmax(inputs, axis=1)
    t_bin = (target[:, 0] != 0).astype(jnp.float32)
    if weight is None:
        weight = [1.0] * n_classes
    smooth = 1e-05
    loss = 0.0
    for i in range(n_classes):
        score = jax.nn.sigmoid(inputs[:, i])
        t = (t_bin == i).astype(jnp.float32)
        intersect = jnp.sum(score * t)
        y_sum = jnp.sum(t * t)
        z_sum = jnp.sum(score * score)
        loss += (1.0 - (2.0 * intersect + smooth) / (z_sum + y_sum + smooth)) * weight[i]
    return loss / n_classes


if __name__ == "__main__":
    key = jax.random.PRNGKey(0)
    k1, k2 = jax.random.split(key)

    B, C, H, W = 2, 4, 16, 16
    inputs = jax.random.normal(k1, (B, C, H, W), dtype=jnp.float32)
    target = jax.random.randint(k2, (B, 1, H, W), 0, C).astype(jnp.float32)

    # softmax=False path
    loss = jax.block_until_ready(dice_loss(inputs, target, n_classes=C))
    ref = _dice_loss_reference(inputs, target, n_classes=C)
    assert jnp.allclose(loss, ref, atol=1e-4, rtol=1e-4), (float(loss), float(ref))

    # softmax=True path (exact reciprocal in-kernel -> tight tolerance)
    loss_sm = jax.block_until_ready(
        dice_loss(inputs, target, n_classes=C, softmax=True))
    ref_sm = _dice_loss_reference(inputs, target, n_classes=C, softmax=True)
    assert jnp.allclose(loss_sm, ref_sm, atol=1e-3, rtol=1e-3), (
        float(loss_sm), float(ref_sm))

    # Unaligned spatial size exercises the pad + in-kernel mask path.
    H2, W2 = 10, 10
    k3, k4 = jax.random.split(k1)
    inputs2 = jax.random.normal(k3, (B, C, H2, W2), dtype=jnp.float32)
    target2 = jax.random.randint(k4, (B, 1, H2, W2), 0, C).astype(jnp.float32)
    loss2 = jax.block_until_ready(dice_loss(inputs2, target2, n_classes=C))
    ref2 = _dice_loss_reference(inputs2, target2, n_classes=C)
    assert jnp.allclose(loss2, ref2, atol=1e-4, rtol=1e-4), (float(loss2), float(ref2))

    print("KERNEL_OK")
</pallas_src>

<mosaic_0001>
module attributes {stable_mosaic.version = 11 : i64} {
  func.func @_dice_sums_kernel(%arg0: i32, %arg1: i32, %arg2: i32, %arg3: memref<1x4x2x128xf32, #tpu.memory_space<vmem>>, %arg4: memref<1x1x2x128xf32, #tpu.memory_space<vmem>>, %arg5: memref<1x3x4x128xf32, #tpu.memory_space<vmem>>) attributes {dimension_semantics = [#tpu.dimension_semantics<parallel>, #tpu.dimension_semantics<arbitrary>, #tpu.dimension_semantics<arbitrary>], iteration_bounds = array<i64: 1, 2, 1>, scalar_prefetch = 0 : i64, scratch_operands = 0 : i64, tpu.core_type = #tpu.core_type<tc>, window_params = [{transform_indices = @transform_0, window_bounds = array<i64: 1, 4, 2, 128>}, {transform_indices = @transform_1, window_bounds = array<i64: 1, 1, 2, 128>}, {transform_indices = @transform_2, window_bounds = array<i64: 1, 3, 4, 128>}]} {
    %c0_i32 = arith.constant 0 : i32
    %0 = arith.cmpi eq, %arg1, %c0_i32 : i32
    %c0_i32_0 = arith.constant 0 : i32
    %1 = arith.cmpi eq, %arg2, %c0_i32_0 : i32
    %2 = arith.andi %0, %1 : i1
    %3 = arith.extui %2 : i1 to i32
    %c0_i32_1 = arith.constant 0 : i32
    %4 = arith.cmpi ne, %3, %c0_i32_1 : i32
    scf.if %4 {
      %cst_25 = arith.constant 0.000000e+00 : f32
      %40 = vector.broadcast %cst_25 : f32 to vector<1x3x4x128xf32>
      %c0_26 = arith.constant 0 : index
      %c0_27 = arith.constant 0 : index
      %c0_28 = arith.constant 0 : index
      %c0_29 = arith.constant 0 : index
      %41 = vector.load %arg5[%c0_26, %c0_27, %c0_28, %c0_29] : memref<1x3x4x128xf32, #tpu.memory_space<vmem>>, vector<1x3x4x128xf32>
      tpu.vector_store %arg5[%c0_26, %c0_27, %c0_28, %c0_29], %40 {strides = array<i32>} : memref<1x3x4x128xf32, #tpu.memory_space<vmem>>, vector<1x3x4x128xf32>,
    } else {
    }
    %c0 = arith.constant 0 : index
    %c0_2 = arith.constant 0 : index
    %c0_3 = arith.constant 0 : index
    %c0_4 = arith.constant 0 : index
    %5 = vector.load %arg3[%c0, %c0_2, %c0_3, %c0_4] : memref<1x4x2x128xf32, #tpu.memory_space<vmem>>, vector<1x4x2x128xf32>
    %6 = vector.shape_cast %5 : vector<1x4x2x128xf32> to vector<4x2x128xf32>
    %cst = arith.constant 5.000000e-01 : f32
    %7 = vector.broadcast %cst : f32 to vector<4x2x128xf32>
    %8 = arith.mulf %7, %6 : vector<4x2x128xf32>
    %9 = math.tanh %8 : vector<4x2x128xf32>
    %cst_5 = arith.constant 1.000000e+00 : f32
    %10 = vector.broadcast %cst_5 : f32 to vector<4x2x128xf32>
    %11 = arith.addf %9, %10 : vector<4x2x128xf32>
    %cst_6 = arith.constant 5.000000e-01 : f32
    %12 = vector.broadcast %cst_6 : f32 to vector<4x2x128xf32>
    %13 = arith.mulf %12, %11 : vector<4x2x128xf32>
    %c0_7 = arith.constant 0 : index
    %c0_8 = arith.constant 0 : index
    %c0_9 = arith.constant 0 : index
    %c0_10 = arith.constant 0 : index
    %14 = vector.load %arg4[%c0_7, %c0_8, %c0_9, %c0_10] : memref<1x1x2x128xf32, #tpu.memory_space<vmem>>, vector<1x1x2x128xf32>
    %15 = vector.shape_cast %14 : vector<1x1x2x128xf32> to vector<1x2x128xf32>
    %cst_11 = arith.constant 0.000000e+00 : f32
    %16 = vector.broadcast %cst_11 : f32 to vector<1x2x128xf32>
    %17 = arith.cmpf one, %15, %16 : vector<1x2x128xf32>
    %18 = arith.extui %17 : vector<1x2x128xi1> to vector<1x2x128xi32>
    %19 = arith.sitofp %18 : vector<1x2x128xi32> to vector<1x2x128xf32>
    %cst_12 = arith.constant 1.000000e+00 : f32
    %20 = vector.broadcast %cst_12 : f32 to vector<1x2x128xf32>
    %21 = arith.subf %20, %19 : vector<1x2x128xf32>
    %22 = tpu.concatenate %21, %19 in 0 : vector<1x2x128xf32>, vector<1x2x128xf32> -> vector<2x2x128xf32>
    %23 = vector.extract_strided_slice %13 {offsets = [0, 0, 0], sizes = [2, 2, 128], strides = [1, 1, 1]} : vector<4x2x128xf32> to vector<2x2x128xf32>
    %24 = arith.mulf %23, %22 : vector<2x2x128xf32>
    %cst_13 = arith.constant dense<0.000000e+00> : vector<2x128xf32>
    %25 = vector.multi_reduction <add>, %24, %cst_13 [1] : vector<2x2x128xf32> to vector<2x128xf32>
    %cst_14 = arith.constant dense<0.000000e+00> : vector<2x128xf32>
    %26 = vector.multi_reduction <add>, %22, %cst_14 [1] : vector<2x2x128xf32> to vector<2x128xf32>
    %27 = arith.mulf %13, %13 : vector<4x2x128xf32>
    %cst_15 = arith.constant dense<0.000000e+00> : vector<4x128xf32>
    %28 = vector.multi_reduction <add>, %27, %cst_15 [1] : vector<4x2x128xf32> to vector<4x128xf32>
    %cst_16 = arith.constant 0.000000e+00 : f32
    %29 = vector.broadcast %cst_16 : f32 to vector<2x128xf32>
    %30 = tpu.concatenate %25, %29 in 0 : vector<2x128xf32>, vector<2x128xf32> -> vector<4x128xf32>
    %31 = tpu.concatenate %26, %29 in 0 : vector<2x128xf32>, vector<2x128xf32> -> vector<4x128xf32>
    %32 = vector.shape_cast %30 : vector<4x128xf32> to vector<1x4x128xf32>
    %33 = vector.shape_cast %31 : vector<4x128xf32> to vector<1x4x128xf32>
    %34 = vector.shape_cast %28 : vector<4x128xf32> to vector<1x4x128xf32>
    %35 = tpu.concatenate %32, %33, %34 in 0 : vector<1x4x128xf32>, vector<1x4x128xf32>, vector<1x4x128xf32> -> vector<3x4x128xf32>
    %c0_17 = arith.constant 0 : index
    %c0_18 = arith.constant 0 : index
    %c0_19 = arith.constant 0 : index
    %c0_20 = arith.constant 0 : index
    %36 = vector.load %arg5[%c0_17, %c0_18, %c0_19, %c0_20] : memref<1x3x4x128xf32, #tpu.memory_space<vmem>>, vector<1x3x4x128xf32>
    %37 = vector.shape_cast %35 : vector<3x4x128xf32> to vector<1x3x4x128xf32>
    %38 = arith.addf %36, %37 : vector<1x3x4x128xf32>
    %c0_21 = arith.constant 0 : index
    %c0_22 = arith.constant 0 : index
    %c0_23 = arith.constant 0 : index
    %c0_24 = arith.constant 0 : index
    %39 = vector.load %arg5[%c0_21, %c0_22, %c0_23, %c0_24] : memref<1x3x4x128xf32, #tpu.memory_space<vmem>>, vector<1x3x4x128xf32>
    tpu.vector_store %arg5[%c0_21, %c0_22, %c0_23, %c0_24], %38 {strides = array<i32>} : memref<1x3x4x128xf32, #tpu.memory_space<vmem>>, vector<1x3x4x128xf32>,
    return
  }
  func.func @transform_0(%arg0: i32, %arg1: i32, %arg2: i32) -> (i32, i32, i32, i32) {
    %c1_i32 = arith.constant 1 : i32
    %0 = arith.muli %arg0, %c1_i32 : i32
    %1 = arith.addi %0, %arg2 : i32
    %c0_i32 = arith.constant 0 : i32
    %2 = arith.minsi %1, %c0_i32 : i32
    %c0_i32_0 = arith.constant 0 : i32
    %c0_i32_1 = arith.constant 0 : i32
    %c0_i32_2 = arith.constant 0 : i32
    return %arg1, %c0_i32_0, %2, %c0_i32_1 : i32, i32, i32, i32
  }
  func.func @transform_1(%arg0: i32, %arg1: i32, %arg2: i32) -> (i32, i32, i32, i32) {
    %c1_i32 = arith.constant 1 : i32
    %0 = arith.muli %arg0, %c1_i32 : i32
    %1 = arith.addi %0, %arg2 : i32
    %c0_i32 = arith.constant 0 : i32
    %2 = arith.minsi %1, %c0_i32 : i32
    %c0_i32_0 = arith.constant 0 : i32
    %c0_i32_1 = arith.constant 0 : i32
    %c0_i32_2 = arith.constant 0 : i32
    return %arg1, %c0_i32_0, %2, %c0_i32_1 : i32, i32, i32, i32
  }
  func.func @transform_2(%arg0: i32, %arg1: i32, %arg2: i32) -> (i32, i32, i32, i32) {
    %c0_i32 = arith.constant 0 : i32
    %c0_i32_0 = arith.constant 0 : i32
    %c0_i32_1 = arith.constant 0 : i32
    %c0_i32_2 = arith.constant 0 : i32
    return %arg0, %c0_i32, %c0_i32_0, %c0_i32_1 : i32, i32, i32, i32
  }
}

</mosaic_0001>

<bundles_post_ra>
// kernel: tpu_custom_call.1
= control target key start
LH: loop header
LB: loop body
LE: loop exit
PB: predicated region body
PF: predicated region fallthrough
CT: control target
= control target key end

     0   :  { %7 = vsyncpa [#allocation3], 0  ;;  %s866_s0 = inlined_call_operand.hbm [shape: f32[2,4,2,128], index: 0, kind: input, shape index: {}]   ;;  %s867_s1 = inlined_call_operand.hbm [shape: f32[2,1,2,128], index: 1, kind: input, shape index: {}]   ;;  %s868_s2 = inlined_call_operand.hbm [shape: f32[1,3,4,128], index: 2, kind: output, shape index: {}]  }
   0x1   :  { %9 = vsyncpa [#allocation3 + $0x1], 0 }
   0x2   :  { %10 = vsyncpa [#allocation6], 0 }
   0x3   :  { %12 = vsyncpa [#allocation6 + $0x1], 0 }
   0x4   :  { %13 = vsyncpa [#allocation4], 0  ;;  %s746_s9 = smov 0   ;;  %s748_s10 = smov 0  }
   0x5   :  { %s750_s11 = smov 0   ;;  %s752_s12 = smov 0  }
   0x6   :  { %s754_s13 = smov 0   ;;  %s756_s14 = smov 0  }
   0x7 LB: > { %s476_s15 = sadd.s32 4294967295, %s722_s14   ;;  %s34_s16 = sadd.s32 1, %s718_s13  ;;  %s722_s14 = sphi %s756_s14, %s19_s14   ;;  %s718_s13 = sphi %s754_s13, %s876_s13   ;;  %s714_s12 = sphi %s752_s12, %s875_s12   ;;  %s710_s11 = sphi %s750_s11, %s874_s11   ;;  %s706_s10 = sphi %s748_s10, %s873_s10   ;;  %s702_s9 = sphi %s746_s9, %s872_s9  }
   0x8   : > { %p36_p0 = scmp.ge.s32.totalorder %s34_s16, 2  ;;  %s53_s17 = sadd.s32 1, %s710_s11 }
   0x9   : > { %p60_p1 = scmp.ne.s32.totalorder %s710_s11, %s706_s10  ;;  %p61_p2 = scmp.eq.s32.totalorder %s722_s14, 0 }
   0xa   : > { %s878_s16 = smov (%p36_p0, %s34_s16), 0  ;;  %p66_p4 = scmp.ne.s32.totalorder %s706_s10, %s702_s9 }
   0xb   : > { %p782_p3 = por %p61_p2, %p60_p1  ;;  %s48_s19 = ssub.s32 %s718_s13, %s878_s16 }
   0xc   : > { %p67_p5 = scmp.eq.s32.totalorder %s476_s15, 0  ;;  %p51_p6 = scmp.eq.s32.totalorder %s48_s19, 0 }
   0xd   : > { %p510_p8 = scmp.lt.s32.totalorder %s722_s14, 2  ;;  %s150_s22 = sand.u32 1, %s710_s11  }
   0xe   : > { %p791_p7 = por %p67_p5, %p66_p4  ;;  %s493_s23 = sshll.u32 %s718_s13, 3 }
   0xf   : > { %s797_s21 = scalar_select %p51_p6, %s710_s11, %s53_s17  }
  0x10   : > { %s479_s24 = sshll.u32 %s150_s22, 3  ;;  %s163_s27 = scalar_lea.hbm %s866_s0, %s493_s23 }
  0x11   : > { %s164_s28 = sshll.u32 %s163_s27, 4  ;;  %s154_s29 = scalar_lea.vmem [#allocation2], %s479_s24  ;;  %s165_s28 = int_to_ptr.hbm [resolvable:$true] %s164_s28 }
  0x12   : > { %s166_s30 = sshll.u32 %s154_s29, 4  ;;  %p806_p9 = pnand %p510_p8, %p782_p3  ;;  %s167_s30 = int_to_ptr.vmem [resolvable:$true] %s166_s30 }
  0x13   : > { %p484_p10 = scmp.ge.s32.totalorder %s722_s14, 1  ;;  %p197_p11 = scmp.lt.s32.totalorder %s722_s14, 3 }
  0x14   : > { %s151_s4 = scalar_lea.sflag [#allocation3], %s150_s22  ;;  %s724_s5 = smov 32  }
  0x15   : > { %s725_s6 = smov 2   ;;  %p198_p12 = pnand %p484_p10, %p197_p11 }
  0x16   : > { %506 = dma.hbm_to_vmem [thread:$0]  (!%p806_p9), %s165_s28, 128, %s167_s30, %s151_s4, %s724_s5, %s724_s5, %s725_s6  }
  0x17   : > { %s482_s7 = sshll.u32 %s150_s22, 1  ;;  %s483_s8 = sshll.u32 %s718_s13, 1 }
  0x18   : > { %s188_s18 = scalar_lea.hbm %s867_s1, %s483_s8  ;;  %s180_s23 = scalar_lea.vmem [#allocation5], %s482_s7 }
  0x19   : > { %s190_s19 = sshll.u32 %s188_s18, 4  ;;  %s192_s24 = sshll.u32 %s180_s23, 4  ;;  %s191_s19 = int_to_ptr.hbm [resolvable:$true] %s190_s19  ;;  %s193_s24 = int_to_ptr.vmem [resolvable:$true] %s192_s24 }
  0x1a   : > { %s177_s25 = scalar_lea.sflag [#allocation6], %s150_s22  ;;  %201 = sbr.rel (%p198_p12) target bundleno = 83 (0x53), region = 28 }
  0x1b   : > { %509 = dma.hbm_to_vmem [thread:$0]  (!%p806_p9), %s191_s19, 32, %s193_s24, %s177_s25  }
  0x1c   : > { %s203_s26 = sand.u32 (!%p198_p12), 1, %s706_s10  }
  0x1d   : > { %s485_s27 = sshll.u32 (!%p198_p12), %s203_s26, 3  ;;  %s204_s28 = scalar_lea.sflag (!%p198_p12), [#allocation3], %s203_s26 }
  0x1e   : > { %s207_s29 = scalar_lea.vmem (!%p198_p12), [#allocation2], %s485_s27 }
  0x1f   : > { %689 = dma.done.wait (%p791_p7), %s204_s28, 128  }
  0x20   : > { %691 = vsyncadd (%p791_p7), %s204_s28, 4294967168  ;;  %s486_s30 = sshll.u32 %s203_s26, 1  ;;  %s214_s4 = scalar_lea.sflag [#allocation6], %s203_s26 }
  0x21   : > { %s217_s5 = scalar_lea.vmem [#allocation5], %s486_s30 }
  0x22   : > { %693 = dma.done.wait (%p791_p7), %s214_s4, 32  }
  0x23   : > { %695 = vsyncadd (%p791_p7), %s214_s4, 4294967264  ;;  %p245_p13 = scmp.eq.s32.totalorder %s714_s12, 0 }
  0x24   : > { %v726_v0 = vmov (%p245_p13), 0.0  }
  0x25   : > { %250 = sbr.rel (!%p245_p13) target bundleno = 42 (0x2a), region = 40  ;;  %251 = vst [vmem:[#allocation7] sm:$0xf] (%p245_p13), %v726_v0 }
  0x26   : > { %252 = vst [vmem:[#allocation7 + $0x4] sm:$0xf] (%p245_p13), %v726_v0 }
  0x27   : > { %253 = vst [vmem:[#allocation7 + $0x8] sm:$0xf] (%p245_p13), %v726_v0 }
  0x2a PF: > { %v254_v1 = vld [vmem:[%s207_s29] sm:$0x3]  ;;  %v255_v2 = vld [vmem:[%s207_s29 + $0x2] sm:$0x3]  ;;  %v274_v3 = vld [vmem:[%s217_s5] sm:$0x3] }
  0x2b   : > { %v258_v4 = vmul.f32 0.5, %v254_v1  ;;  %v259_v5 = vmul.f32 0.5, %v255_v2  ;;  %vm275_vm0 = vcmp.ne.f32.partialorder %v274_v3, 0.0  ;;  %v727_v6 = vmov 0.0   ;;  %v256_v10 = vld [vmem:[%s207_s29 + $0x4] sm:$0x3] }
  0x2c   : > { %v488_v7 = vsel %vm275_vm0, 1.0, %v727_v6  ;;  %vm281_vm1 = vcmask 1041408   ;;  %v257_v11 = vld [vmem:[%s207_s29 + $0x6] sm:$0x3]  ;;  %v260_v13 = vmul.f32 0.5, %v256_v10  ;;  %vm344_vm2 = vcmask 1041409  }
  0x2d   : > { %568 = vtanh.f32 %v258_v4  ;;  %v278_v8 = vsub.f32 1.0, %v488_v7  ;;  %v303_v9 = vsel %vm281_vm1, %v488_v7, 0.0  ;;  %v261_v14 = vmul.f32 0.5, %v257_v11  ;;  %v364_v46 = vld [vmem:[#allocation7 + $0x4] sm:$0xf]  ;;  %s728_s12 = smov [#allocation7]  }
  0x2e   : > { %570 = vtanh.f32 %v259_v5  ;;  %v304_v12 = vrot.slane %v303_v9, 4  ;;  %vm358_vm3 = vcmask 1042434   ;;  %vm360_vm4 = vcmask 1043459   ;;  %s380_s20 = sshll.u32 %s728_s12, 4  ;;  %s382_s6 = sshll.u32 %s868_s2, 4  ;;  %s381_s20 = int_to_ptr.vmem [resolvable:$true] %s380_s20  ;;  %s383_s6 = int_to_ptr.hbm [resolvable:$true] %s382_s6 }
  0x2f   : > { %v296_v15 = vsel %vm281_vm1, %v278_v8, 0.0  ;;  %572 = vtanh.f32 %v260_v13  ;;  %p511_p0 = scmp.eq.s32.totalorder %s476_s15, 1  ;;  %s729_s7 = smov 64  }
  0x30   : > { %v297_v16 = vrot.slane %v296_v15, 4  ;;  %v305_v17 = vadd.f32 %v304_v12, %v303_v9  ;;  %574 = vtanh.f32 %v261_v14  ;;  %s730_s8 = smov 4  }
  0x32   : > { %v298_v18 = vadd.f32 %v297_v16, %v296_v15  ;;  %v306_v19 = vrot.slane %v305_v17, 2 }
  0x33   : > { %v569_v20 = vpop.eup %568 }
  0x34   : > { %v571_v21 = vpop.eup %570  ;;  %v266_v22 = vadd.f32 1.0, %v569_v20  ;;  %v299_v23 = vrot.slane %v298_v18, 2  ;;  %v307_v24 = vadd.f32 %v306_v19, %v305_v17 }
  0x35   : > { %v267_v25 = vadd.f32 1.0, %v571_v21  ;;  %v573_v26 = vpop.eup %572 }
  0x36   : > { %v270_v27 = vmul.f32 0.5, %v266_v22  ;;  %v300_v28 = vadd.f32 %v299_v23, %v298_v18  ;;  %v308_v29 = vrot.slane %v307_v24, 1  ;;  %v575_v30 = vpop.eup %574  ;;  %v268_v32 = vadd.f32 1.0, %v573_v26  ;;  %v363_v22 = vld [vmem:[#allocation7] sm:$0xf] }
  0x37   : > { %v271_v31 = vmul.f32 0.5, %v267_v25  ;;  %v269_v36 = vadd.f32 1.0, %v575_v30 }
  0x38   : > { %v279_v33 = vmul.f32 %v278_v8, %v270_v27  ;;  %v301_v34 = vrot.slane %v300_v28, 1  ;;  %v309_v35 = vadd.f32 %v308_v29, %v307_v24  ;;  %v272_v38 = vmul.f32 0.5, %v268_v32  ;;  %v365_v32 = vld [vmem:[#allocation7 + $0x8] sm:$0xf] }
  0x39   : > { %v280_v37 = vmul.f32 %v488_v7, %v271_v31  ;;  %v310_v39 = vmul.f32 %v270_v27, %v270_v27  ;;  %v311_v40 = vmul.f32 %v271_v31, %v271_v31  ;;  %v273_v43 = vmul.f32 0.5, %v269_v36 }
  0x3a   : > { %v282_v41 = vsel %vm281_vm1, %v279_v33, 0.0  ;;  %v302_v42 = vadd.f32 %v301_v34, %v300_v28  ;;  %v312_v47 = vmul.f32 %v272_v38, %v272_v38 }
  0x3b   : > { %v283_v44 = vrot.slane %v282_v41, 4  ;;  %v289_v45 = vsel %vm281_vm1, %v280_v37, 0.0  ;;  %v314_v48 = vsel %vm281_vm1, %v310_v39, 0.0  ;;  %v313_v51 = vmul.f32 %v273_v43, %v273_v43 }
  0x3c   : > { %v290_v49 = vrot.slane %v289_v45, 4  ;;  %v350_v50 = vsel %vm344_vm2, %v309_v35, %v302_v42  ;;  %v315_v52 = vrot.slane %v314_v48, 4  ;;  %v321_v55 = vsel %vm281_vm1, %v311_v40, 0.0 }
  0x3d   : > { %v284_v53 = vadd.f32 %v283_v44, %v282_v41  ;;  %v352_v54 = vsel %vm281_vm1, %v350_v50, 0.0  ;;  %v328_v56 = vsel %vm281_vm1, %v312_v47, 0.0  ;;  %v322_v60 = vrot.slane %v321_v55, 4 }
  0x3e   : > { %v291_v57 = vadd.f32 %v290_v49, %v289_v45  ;;  %v367_v58 = vadd.f32 %v364_v46, %v352_v54  ;;  %v316_v59 = vadd.f32 %v315_v52, %v314_v48  ;;  %v329_v62 = vrot.slane %v328_v56, 4 }
  0x3f   : > { %v285_v61 = vrot.slane %v284_v53, 2  ;;  %v335_v63 = vsel %vm281_vm1, %v313_v51, 0.0  ;;  %v323_v2 = vadd.f32 %v322_v60, %v321_v55 }
  0x40   : > { %v292_v0 = vrot.slane %v291_v57, 2  ;;  %370 = vst [vmem:[#allocation7 + $0x4] sm:$0xf] %v367_v58  ;;  %v317_v1 = vrot.slane %v316_v59, 2  ;;  %v336_v3 = vrot.slane %v335_v63, 4  ;;  %v330_v5 = vadd.f32 %v329_v62, %v328_v56 }
  0x41   : > { %v286_v4 = vadd.f32 %v285_v61, %v284_v53  ;;  %v324_v8 = vrot.slane %v323_v2, 2 }
  0x42   : > { %v293_v6 = vadd.f32 %v292_v0, %v291_v57  ;;  %v318_v7 = vadd.f32 %v317_v1, %v316_v59  ;;  %v337_v9 = vadd.f32 %v336_v3, %v335_v63  ;;  %v331_v11 = vrot.slane %v330_v5, 2 }
  0x43   : > { %v287_v10 = vrot.slane %v286_v4, 1  ;;  %v325_v14 = vadd.f32 %v324_v8, %v323_v2 }
  0x44   : > { %v294_v12 = vrot.slane %v293_v6, 1  ;;  %v319_v13 = vrot.slane %v318_v7, 1  ;;  %v338_v15 = vrot.slane %v337_v9, 2  ;;  %v332_v17 = vadd.f32 %v331_v11, %v330_v5 }
  0x45   : > { %v288_v16 = vadd.f32 %v287_v10, %v286_v4  ;;  %v326_v20 = vrot.slane %v325_v14, 1 }
  0x46   : > { %v295_v18 = vadd.f32 %v294_v12, %v293_v6  ;;  %v320_v19 = vadd.f32 %v319_v13, %v318_v7  ;;  %v339_v21 = vadd.f32 %v338_v15, %v337_v9  ;;  %v333_v23 = vrot.slane %v332_v17, 1 }
  0x47   : > { %v327_v25 = vadd.f32 %v326_v20, %v325_v14 }
  0x48   : > { %v345_v24 = vsel %vm344_vm2, %v295_v18, %v288_v16  ;;  %v340_v26 = vrot.slane %v339_v21, 1  ;;  %v334_v28 = vadd.f32 %v333_v23, %v332_v17 }
  0x49   : > { %v347_v27 = vsel %vm281_vm1, %v345_v24, 0.0  ;;  %v357_v31 = vsel %vm344_vm2, %v327_v25, %v320_v19 }
  0x4a   : > { %v366_v29 = vadd.f32 %v363_v22, %v347_v27  ;;  %v341_v30 = vadd.f32 %v340_v26, %v339_v21  ;;  %v359_v33 = vsel %vm358_vm3, %v334_v28, %v357_v31 }
  0x4c   : > { %369 = vst [vmem:[#allocation7] sm:$0xf] %v366_v29  ;;  %v361_v34 = vsel %vm360_vm4, %v341_v30, %v359_v33 }
  0x4d   : > { %v368_v35 = vadd.f32 %v365_v32, %v361_v34 }
  0x4f   : > { %371 = vst [vmem:[#allocation7 + $0x8] sm:$0xf] %v368_v35 }
  0x50   : > { %500 = dma.vmem_to_hbm [thread:$0]  (%p511_p0), %s381_s20, 192, %s383_s6, [#allocation4], %s729_s7, %s729_s7, %s730_s8  }
  0x51   : > { %697 = dma.done.wait (%p511_p0), [#allocation4], 192  }
  0x52   : > { %699 = vsyncadd (%p511_p0), [#allocation4], 4294967104 }
  0x53 PF: > { %s19_s14 = sadd.s32 1, %s722_s14   ;;  %s872_s9 = smov %s706_s10 }
  0x54   : > { %p16_p1 = scmp.ge.s32.totalorder %s19_s14, 4   ;;  %s873_s10 = smov %s710_s11 }
  0x55   : > { %s874_s11 = smov %s797_s21  ;;  %s875_s12 = smov %s718_s13 }
  0x56   : > { %s876_s13 = smov %s878_s16  ;;  %18 = sbr.rel (!%p16_p1) target bundleno = 7 (0x7), region = 83 }
  0x5b   :  { %399 = vsyncpa [#allocation3], 1 }
  0x5c   :  { %401 = vsyncpa [#allocation3 + $0x1], 1 }
  0x5d   :  { %402 = vsyncpa [#allocation6], 1 }
  0x5e   :  { %404 = vsyncpa [#allocation6 + $0x1], 1 }
  0x5f   :  { %405 = vsyncpa [#allocation4], 1 }
  0x60   :  { %407 = vsyncpa [#allocation4 + $0x1], 1 }

</bundles_post_ra>
